<compile_context>
chip_gen: v6e
topology: v6e:2x2x1
jax: 0.10.0
libtpu: 0.0.40
codegen_flags: <defaults>
</compile_context>

<pallas_src>
import functools

import jax
import jax.numpy as jnp
from jax import lax
from jax.experimental import pallas as pl
from jax.experimental.pallas import tpu as pltpu


def _rf_kernel(x_ref, p_ref, a_ref, o_ref, *, kh_taps):
    """relu( sum_kh  p[kh] @ x @ a[kh] )  -- 2*KH MXU matmuls + ReLU.

    x_ref: (B*H,  G*W*Cin)           lane-dense activations (G samples per lane group)
    p_ref: (KH, B*Hh, B*H)           folded row-pool + row-shift, block-diag over B
    a_ref: (KH, G*W*Cin, G*Wh*Cout)  folded col-pool + conv band, block-diag over G
    o_ref: (B*Hh, G*Wh*Cout)
    """
    f32 = jnp.float32
    x = x_ref[...]
    acc = jnp.zeros(o_ref.shape, f32)
    for kh in range(kh_taps):  # static unroll; KH is small (e.g. 3)
        rows = jnp.dot(p_ref[kh], x, preferred_element_type=f32).astype(x.dtype)
        acc = acc + jnp.dot(rows, a_ref[kh], preferred_element_type=f32)
    o_ref[...] = jnp.maximum(acc, 0.0).astype(o_ref.dtype)


def _largest_divisor_leq(n, cap):
    cap = max(1, min(n, cap))
    for d in range(cap, 0, -1):
        if n % d == 0:
            return d
    return 1


def _pick_lane_pack(n, out_lane, max_pack=8):
    """Smallest divisor G of n making the output lane width a multiple of 128."""
    for g in range(1, min(n, max_pack) + 1):
        if n % g == 0 and (g * out_lane) % 128 == 0:
            return g
    return 1  # fall back: accept masked (<128-lane) stores


def _pick_row_pack(n_packs, rows_per_pack, target_rows=256):
    """Largest divisor B of n_packs with B*rows_per_pack <= target_rows, keeping
    >= 2 grid steps when possible (v7x has two TensorCores)."""
    b = _largest_divisor_leq(n_packs, max(1, target_rows // rows_per_pack))
    while b > 1 and n_packs // b < 2:
        b = _largest_divisor_leq(n_packs, b - 1)
    return b


def _fold_rf_operands(w_oihw, H, W, lane_pack, row_pack, dtype):
    """Fold AvgPool2d(2) + Conv2d('same', zero pad) into per-row-tap matmul operands.

    Returns:
      p_blk: (KH, B*Hh, B*H)           p_blk[kh] = kron(I_B, row_shift[kh] @ row_pool)
      a_blk: (KH, G*W*Cin, G*Wh*Cout)  a_blk[kh] = kron(I_G, col_pool @ conv_band[kh])
    Input-independent; recompute only when the conv weights change.
    """
    Cout, Cin, KH, KW = w_oihw.shape
    Hh, Wh = H // 2, W // 2
    pad_h, pad_w = (KH - 1) // 2, (KW - 1) // 2
    f32 = jnp.float32

    # P[kh, r, h] = 0.5 if h//2 == r + kh - pad_h else 0  (row pool + row shift; zero
    # rows at the boundary reproduce the 'same' zero padding along H).
    r = jnp.arange(Hh)[:, None]
    h = jnp.arange(H)[None, :]
    p = jnp.stack([(h // 2) == (r + kh - pad_h) for kh in range(KH)]).astype(f32) * 0.5

    # A[kh, w*Cin+ci, j*Cout+co] = 0.5 * w[co, ci, kh, w//2 - j + pad_w]  (0 off-band).
    k_hwio = jnp.transpose(w_oihw, (2, 3, 1, 0)).astype(f32)            # (KH, KW, Cin, Cout)
    dv = (jnp.arange(W) // 2)[:, None] - jnp.arange(Wh)[None, :] + pad_w     # (W, Wh)
    sel = (dv[None] == jnp.arange(KW)[:, None, None]).astype(f32)            # (KW, W, Wh)
    a = 0.5 * jnp.einsum("xwj,kxcd->kwcjd", sel, k_hwio).reshape(KH, W * Cin, Wh * Cout)

    # Block-diagonal replication: B samples stacked along M (rows), G along lanes.
    eye_b = jnp.eye(row_pack, dtype=f32)
    p_blk = jnp.einsum("bc,krh->kbrch", eye_b, p).reshape(KH, row_pack * Hh, row_pack * H)
    eye_g = jnp.eye(lane_pack, dtype=f32)
    a_blk = jnp.einsum("gf,kmn->kgmfn", eye_g, a).reshape(
        KH, lane_pack * W * Cin, lane_pack * Wh * Cout)
    return p_blk.astype(dtype), a_blk.astype(dtype)


def spatio_temporal_rf_forward(x_nchw, w_oihw, state=None, *, compute_dtype=jnp.float32):
    """SpatioTemporalRF.forward: AvgPool2d(2) -> Conv2d('same', bias=False) -> ReLU.

    x_nchw: (N, Cin, H, W); w_oihw: (Cout, Cin, KH, KW) (PyTorch layouts).
    Returns (y_nchw, state); state is None for activation='relu'.
    compute_dtype: float32 (default, v5e-safe) or bfloat16 (v6e/v7x matmul operands).
    """
    N, Cin, H, W = x_nchw.shape
    Cout, Cin_w, KH, KW = w_oihw.shape
    assert Cin_w == Cin
    assert H % 2 == 0 and W % 2 == 0, "AvgPool2d(2) path assumes even spatial dims"
    assert KH % 2 == 1 and KW % 2 == 1, "'same' padding implemented for odd kernels"
    Hh, Wh = H // 2, W // 2

    # Tiling: G samples packed along lanes (lane-dense loads/stores), B lane-packs
    # stacked along the MXU M dimension per grid step.
    G = _pick_lane_pack(N, Wh * Cout)
    n_packs = N // G
    B = _pick_row_pack(n_packs, H)
    grid_steps = n_packs // B
    in_lane, out_lane = G * W * Cin, G * Wh * Cout

    # Layout plumbing: NCHW -> (n_packs*H, G*W*Cin), channel fastest on the lane axis.
    # (Across stacked layers, keep activations in this lane-dense layout instead of
    #  transposing NCHW <-> lane-dense on every call.)
    x2 = jnp.transpose(x_nchw.reshape(n_packs, G, Cin, H, W), (0, 3, 1, 4, 2))
    x2 = x2.reshape(n_packs * H, in_lane).astype(compute_dtype)

    # Folded, grid-invariant operands (constant-fold under jit; per-weight-update only).
    p_blk, a_blk = _fold_rf_operands(w_oihw, H, W, G, B, compute_dtype)

    flops = 2 * KH * grid_steps * (
        (B * Hh) * (B * H) * in_lane + (B * Hh) * in_lane * out_lane)
    bytes_accessed = (x2.size * x2.dtype.itemsize
                      + n_packs * Hh * out_lane * 4
                      + p_blk.size * p_blk.dtype.itemsize
                      + a_blk.size * a_blk.dtype.itemsize)

    kernel = functools.partial(_rf_kernel, kh_taps=KH)
    y2 = pl.pallas_call(
        kernel,
        out_shape=jax.ShapeDtypeStruct((n_packs * Hh, out_lane), jnp.float32),
        grid=(grid_steps,),
        in_specs=[
            pl.BlockSpec((B * H, in_lane), lambda n: (n, 0)),
            # Grid-invariant operands: constant index_map keeps them VMEM-resident.
            # (At production Wh on v7x: single-buffer via pl.Buffered(1) and/or raise
            #  vmem_limit_bytes; not needed at these sizes, so defaults are kept.)
            pl.BlockSpec((KH, B * Hh, B * H), lambda n: (0, 0, 0)),
            pl.BlockSpec((KH, in_lane, out_lane), lambda n: (0, 0, 0)),
        ],
        out_specs=pl.BlockSpec((B * Hh, out_lane), lambda n: (n, 0)),
        compiler_params=pltpu.CompilerParams(dimension_semantics=("parallel",)),
        cost_estimate=pl.CostEstimate(
            flops=int(flops), transcendentals=0, bytes_accessed=int(bytes_accessed)),
    )(x2, p_blk, a_blk)

    # Layout plumbing back: (n_packs*Hh, G*Wh*Cout) -> NCHW.
    y = jnp.transpose(y2.reshape(n_packs, Hh, G, Wh, Cout), (0, 2, 4, 1, 3))
    y = y.reshape(N, Cout, Hh, Wh)
    # TODO(synk): activation='lif'/'li' (norse LIFBox/LIBox cells) carry recurrent
    # membrane state across time steps; with activation='relu' the state is None.
    return y, None


def _ref_forward(x_nchw, w_oihw):
    """Pure-JAX reference (correctness check only)."""
    N, C, H, W = x_nchw.shape
    p = x_nchw.astype(jnp.float32).reshape(N, C, H // 2, 2, W // 2, 2).mean(axis=(3, 5))
    y = lax.conv_general_dilated(
        p, w_oihw.astype(jnp.float32), window_strides=(1, 1), padding="SAME",
        dimension_numbers=("NCHW", "OIHW", "NCHW"))
    return jnp.maximum(y, 0.0)


if __name__ == "__main__":
    key = jax.random.PRNGKey(0)
    # SpatioTemporalRF: channels_in=4, kernel_size=3, channels_out=len(rf_parameters)=8
    N, Cin, H, W = 2, 4, 16, 16
    Cout, K = 8, 3

    kx, kw = jax.random.split(key)
    x = jax.random.normal(kx, (N, Cin, H, W), jnp.float32)
    w = jax.random.normal(kw, (Cout, Cin, K, K), jnp.float32) / jnp.sqrt(float(K * K * Cin))

    out, state = spatio_temporal_rf_forward(x, w)
    out = jax.block_until_ready(out)

    ref = _ref_forward(x, w)
    assert out.shape == ref.shape == (N, Cout, H // 2, W // 2), (out.shape, ref.shape)
    max_err = float(jnp.max(jnp.abs(out - ref)))
    assert max_err < 2e-2, max_err
    assert state is None
    print("KERNEL_OK")
</pallas_src>

<mosaic_0001>
module attributes {stable_mosaic.version = 11 : i64} {
  func.func @_rf_kernel(%arg0: i32, %arg1: memref<16x128xf32, #tpu.memory_space<vmem>>, %arg2: memref<3x8x16xf32, #tpu.memory_space<vmem>>, %arg3: memref<3x128x128xf32, #tpu.memory_space<vmem>>, %arg4: memref<8x128xf32, #tpu.memory_space<vmem>>) attributes {dimension_semantics = [#tpu.dimension_semantics<parallel>], iteration_bounds = array<i64: 1>, scalar_prefetch = 0 : i64, scratch_operands = 0 : i64, tpu.core_type = #tpu.core_type<tc>, window_params = [{transform_indices = @transform_0, window_bounds = array<i64: 16, 128>}, {pipeline_mode = #tpu.pipeline_mode<synchronous>, transform_indices = @transform_1, window_bounds = array<i64: 3, 8, 16>}, {pipeline_mode = #tpu.pipeline_mode<synchronous>, transform_indices = @transform_2, window_bounds = array<i64: 3, 128, 128>}, {transform_indices = @transform_3, window_bounds = array<i64: 8, 128>}]} {
    %c0 = arith.constant 0 : index
    %c0_0 = arith.constant 0 : index
    %0 = vector.load %arg1[%c0, %c0_0] : memref<16x128xf32, #tpu.memory_space<vmem>>, vector<16x128xf32>
    %cst = arith.constant 0.000000e+00 : f32
    %1 = vector.broadcast %cst : f32 to vector<8x128xf32>
    %c0_1 = arith.constant 0 : index
    %c0_2 = arith.constant 0 : index
    %c0_3 = arith.constant 0 : index
    %2 = vector.load %arg2[%c0_1, %c0_2, %c0_3] : memref<3x8x16xf32, #tpu.memory_space<vmem>>, vector<1x8x16xf32>
    %3 = vector.shape_cast %2 : vector<1x8x16xf32> to vector<8x16xf32>
    %cst_4 = arith.constant dense<0.000000e+00> : vector<8x128xf32>
    %4 = tpu.matmul %3, %0, %cst_4 {dimension_numbers = #tpu.dot_dimension_numbers<[1], [0], [0], [1], [0, 0, 1, 1], [], []>} : vector<8x16xf32>, vector<16x128xf32>, vector<8x128xf32> -> vector<8x128xf32>
    %c0_5 = arith.constant 0 : index
    %c0_6 = arith.constant 0 : index
    %c0_7 = arith.constant 0 : index
    %5 = vector.load %arg3[%c0_5, %c0_6, %c0_7] : memref<3x128x128xf32, #tpu.memory_space<vmem>>, vector<1x128x128xf32>
    %6 = vector.shape_cast %5 : vector<1x128x128xf32> to vector<128x128xf32>
    %cst_8 = arith.constant dense<0.000000e+00> : vector<8x128xf32>
    %7 = tpu.matmul %4, %6, %cst_8 {dimension_numbers = #tpu.dot_dimension_numbers<[1], [0], [0], [1], [0, 0, 1, 1], [], []>} : vector<8x128xf32>, vector<128x128xf32>, vector<8x128xf32> -> vector<8x128xf32>
    %8 = arith.addf %1, %7 : vector<8x128xf32>
    %c1 = arith.constant 1 : index
    %c0_9 = arith.constant 0 : index
    %c0_10 = arith.constant 0 : index
    %9 = vector.load %arg2[%c1, %c0_9, %c0_10] : memref<3x8x16xf32, #tpu.memory_space<vmem>>, vector<1x8x16xf32>
    %10 = vector.shape_cast %9 : vector<1x8x16xf32> to vector<8x16xf32>
    %cst_11 = arith.constant dense<0.000000e+00> : vector<8x128xf32>
    %11 = tpu.matmul %10, %0, %cst_11 {dimension_numbers = #tpu.dot_dimension_numbers<[1], [0], [0], [1], [0, 0, 1, 1], [], []>} : vector<8x16xf32>, vector<16x128xf32>, vector<8x128xf32> -> vector<8x128xf32>
    %c1_12 = arith.constant 1 : index
    %c0_13 = arith.constant 0 : index
    %c0_14 = arith.constant 0 : index
    %12 = vector.load %arg3[%c1_12, %c0_13, %c0_14] : memref<3x128x128xf32, #tpu.memory_space<vmem>>, vector<1x128x128xf32>
    %13 = vector.shape_cast %12 : vector<1x128x128xf32> to vector<128x128xf32>
    %cst_15 = arith.constant dense<0.000000e+00> : vector<8x128xf32>
    %14 = tpu.matmul %11, %13, %cst_15 {dimension_numbers = #tpu.dot_dimension_numbers<[1], [0], [0], [1], [0, 0, 1, 1], [], []>} : vector<8x128xf32>, vector<128x128xf32>, vector<8x128xf32> -> vector<8x128xf32>
    %15 = arith.addf %8, %14 : vector<8x128xf32>
    %c2 = arith.constant 2 : index
    %c0_16 = arith.constant 0 : index
    %c0_17 = arith.constant 0 : index
    %16 = vector.load %arg2[%c2, %c0_16, %c0_17] : memref<3x8x16xf32, #tpu.memory_space<vmem>>, vector<1x8x16xf32>
    %17 = vector.shape_cast %16 : vector<1x8x16xf32> to vector<8x16xf32>
    %cst_18 = arith.constant dense<0.000000e+00> : vector<8x128xf32>
    %18 = tpu.matmul %17, %0, %cst_18 {dimension_numbers = #tpu.dot_dimension_numbers<[1], [0], [0], [1], [0, 0, 1, 1], [], []>} : vector<8x16xf32>, vector<16x128xf32>, vector<8x128xf32> -> vector<8x128xf32>
    %c2_19 = arith.constant 2 : index
    %c0_20 = arith.constant 0 : index
    %c0_21 = arith.constant 0 : index
    %19 = vector.load %arg3[%c2_19, %c0_20, %c0_21] : memref<3x128x128xf32, #tpu.memory_space<vmem>>, vector<1x128x128xf32>
    %20 = vector.shape_cast %19 : vector<1x128x128xf32> to vector<128x128xf32>
    %cst_22 = arith.constant dense<0.000000e+00> : vector<8x128xf32>
    %21 = tpu.matmul %18, %20, %cst_22 {dimension_numbers = #tpu.dot_dimension_numbers<[1], [0], [0], [1], [0, 0, 1, 1], [], []>} : vector<8x128xf32>, vector<128x128xf32>, vector<8x128xf32> -> vector<8x128xf32>
    %22 = arith.addf %15, %21 : vector<8x128xf32>
    %cst_23 = arith.constant 0.000000e+00 : f32
    %23 = vector.broadcast %cst_23 : f32 to vector<8x128xf32>
    %24 = arith.maximumf %22, %23 : vector<8x128xf32>
    %c0_24 = arith.constant 0 : index
    %c0_25 = arith.constant 0 : index
    %25 = vector.load %arg4[%c0_24, %c0_25] : memref<8x128xf32, #tpu.memory_space<vmem>>, vector<8x128xf32>
    tpu.vector_store %arg4[%c0_24, %c0_25], %24 {strides = array<i32>} : memref<8x128xf32, #tpu.memory_space<vmem>>, vector<8x128xf32>,
    return
  }
  func.func @transform_0(%arg0: i32) -> (i32, i32) {
    %c0_i32 = arith.constant 0 : i32
    %c0_i32_0 = arith.constant 0 : i32
    return %arg0, %c0_i32 : i32, i32
  }
  func.func @transform_1(%arg0: i32) -> (i32, i32, i32) {
    %c0_i32 = arith.constant 0 : i32
    %c0_i32_0 = arith.constant 0 : i32
    %c0_i32_1 = arith.constant 0 : i32
    %c0_i32_2 = arith.constant 0 : i32
    return %c0_i32, %c0_i32_0, %c0_i32_1 : i32, i32, i32
  }
  func.func @transform_2(%arg0: i32) -> (i32, i32, i32) {
    %c0_i32 = arith.constant 0 : i32
    %c0_i32_0 = arith.constant 0 : i32
    %c0_i32_1 = arith.constant 0 : i32
    %c0_i32_2 = arith.constant 0 : i32
    return %c0_i32, %c0_i32_0, %c0_i32_1 : i32, i32, i32
  }
  func.func @transform_3(%arg0: i32) -> (i32, i32) {
    %c0_i32 = arith.constant 0 : i32
    %c0_i32_0 = arith.constant 0 : i32
    return %arg0, %c0_i32 : i32, i32
  }
}

</mosaic_0001>

<bundles_post_ra>
// kernel: tpu_custom_call.1
= control target key start
LH: loop header
LB: loop body
LE: loop exit
PB: predicated region body
PF: predicated region fallthrough
CT: control target
= control target key end

     0   :  { %8 = vsyncpa [#allocation3], 0  ;;  %s964_s0 = inlined_call_operand.hbm [shape: f32[16,128], index: 0, kind: input, shape index: {}]   ;;  %s965_s1 = inlined_call_operand.hbm [shape: f32[3,8,16], index: 1, kind: input, shape index: {}]   ;;  %s966_s2 = inlined_call_operand.hbm [shape: f32[3,128,128], index: 2, kind: input, shape index: {}]   ;;  %s967_s3 = inlined_call_operand.hbm [shape: f32[8,128], index: 3, kind: output, shape index: {}]  }
   0x1   :  { %9 = vsyncpa [#allocation6], 0 }
   0x2   :  { %10 = vsyncpa [#allocation4], 0  ;;  %s845_s12 = smov [#allocation5]   ;;  %s846_s14 = smov [#allocation2]  }
   0x3   :  { %s28_s13 = sshll.u32 %s845_s12, 4  ;;  %s16_s15 = sshll.u32 %s846_s14, 4  ;;  %s29_s13 = int_to_ptr.vmem [resolvable:$true] %s28_s13  ;;  %s17_s15 = int_to_ptr.vmem [resolvable:$true] %s16_s15 }
   0x4   :  { %s767_s16 = scalar_lea.vmem %s29_s13, 384  ;;  %p772_p1 = scmp.lt.s32.totalorder %s29_s13, %s29_s13 }
   0x5   :  { %p768_p0 = scmp.ne.s32.totalorder %s29_s13, %s767_s16  ;;  %p773_p2 = scmp.lt.s32.totalorder %s767_s16, %s767_s16 }
   0x7   :  { %p774_p3 = por %p773_p2, %p772_p1 }
   0x9   :  { %p775_p4 = pnand %p774_p3, %p768_p0 }
   0xb   :  { %778 = shalt.err (!%p775_p4)
}
   0xc   :  { %s847_s17 = smov 128   ;;  %s848_s18 = smov 8  }
   0xd   :  { %34 = dma.hbm_to_vmem [thread:$0]  %s965_s1, 384, %s29_s13, [#allocation6], %s847_s17, %s847_s17, %s848_s18  }
   0xe   :  { %s787_s21 = scalar_lea.vmem %s17_s15, 256  ;;  %p792_p6 = scmp.lt.s32.totalorder %s17_s15, %s17_s15 }
   0xf   :  { %p788_p5 = scmp.ne.s32.totalorder %s17_s15, %s787_s21  ;;  %p793_p7 = scmp.lt.s32.totalorder %s787_s21, %s787_s21 }
  0x11   :  { %p794_p8 = por %p793_p7, %p792_p6 }
  0x13   :  { %p795_p9 = pnand %p794_p8, %p788_p5 }
  0x15   :  { %798 = shalt.err (!%p795_p9)
}
  0x16   :  { %22 = dma.hbm_to_vmem [thread:$0]  %s964_s0, 256, %s17_s15, [#allocation3], %s847_s17, %s847_s17, %s848_s18  }
  0x17   :  { %s849_s24 = smov [#allocation7]  }
  0x18   :  { %s40_s25 = sshll.u32 %s849_s24, 4  ;;  %s41_s25 = int_to_ptr.vmem [resolvable:$true] %s40_s25 }
  0x19   :  { %s807_s26 = scalar_lea.vmem %s41_s25, 6144  ;;  %p812_p11 = scmp.lt.s32.totalorder %s41_s25, %s41_s25 }
  0x1a   :  { %p808_p10 = scmp.ne.s32.totalorder %s41_s25, %s807_s26  ;;  %p813_p12 = scmp.lt.s32.totalorder %s807_s26, %s807_s26 }
  0x1c   :  { %p814_p13 = por %p813_p12, %p812_p11 }
  0x1e   :  { %p815_p0 = pnand %p814_p13, %p808_p10 }
  0x20   :  { %818 = shalt.err (!%p815_p0)
}
  0x21   :  { %46 = dma.hbm_to_vmem [thread:$0]  %s966_s2, 6144, %s41_s25, [#allocation6], %s847_s17, %s847_s17, %s848_s18  }
  0x22   :  { %839 = dma.done.wait [#allocation3], 256  }
  0x23   :  { %840 = vsyncadd [#allocation3], 4294967040 }
  0x24   :  { %841 = dma.done.wait [#allocation6], 6528  }
  0x25   :  { %842 = vsyncadd [#allocation6], 4294960768  ;;  %v850_v0 = vmov 0.0   ;;  %vm851_vm0 = vmmov 0   ;;  %v888_v1 = vld [vmem:[#allocation2 + $0x8] sm:$0xff]  ;;  %v890_v2 = vld [vmem:[#allocation2] sm:$0xff] }
  0x26   :  { %625 = vmatprep.subr.mxu0 %v850_v0  ;;  %629 = vmatprep.mubr.msk.f32.mxu0 %vm851_vm0, %v850_v0  ;;  %v58_v3 = vld [vmem:[#allocation5] sm:$0xff]  ;;  %vm59_vm1 = vcmask 130048   ;;  %v148_v4 = vld [vmem:[#allocation7 + $0x78] sm:$0xff]  ;;  %v147_v5 = vld [vmem:[#allocation7 + $0x70] sm:$0xff]  ;;  %s852_s0 = smov [#allocation8]  }
  0x27   :  { %674 = vmatprep.subr.mxu1 %v850_v0  ;;  %706 = vmatprep.mubr.msk.f32.mxu1 %vm851_vm0, %v850_v0  ;;  %v150_v6 = vld [vmem:[#allocation5 + $0x8] sm:$0xff]  ;;  %v240_v7 = vld [vmem:[#allocation7 + $0xf8] sm:$0xff]  ;;  %v146_v8 = vld [vmem:[#allocation7 + $0x68] sm:$0xff]  ;;  %s552_s2 = sshll.u32 %s852_s0, 4  ;;  %s553_s2 = int_to_ptr.vmem [resolvable:$true] %s552_s2 }
  0x28   :  { %626 = vmatpush3.msra.mxu0 %v888_v1  ;;  %675 = vmatpush3.msra.mxu1 %v148_v4  ;;  %v239_v9 = vld [vmem:[#allocation7 + $0xf0] sm:$0xff]  ;;  %v145_v10 = vld [vmem:[#allocation7 + $0x60] sm:$0xff]  ;;  %v238_v11 = vld [vmem:[#allocation7 + $0xe8] sm:$0xff]  ;;  %s819_s28 = scalar_lea.vmem %s553_s2, 128  ;;  %p824_p2 = scmp.lt.s32.totalorder %s553_s2, %s553_s2 }
  0x29   :  { %627 = vmatprep.subr.mxu0 %v850_v0  ;;  %676 = vmatprep.subr.mxu1 %v850_v0  ;;  %v144_v12 = vld [vmem:[#allocation7 + $0x58] sm:$0xff]  ;;  %v237_v13 = vld [vmem:[#allocation7 + $0xe0] sm:$0xff]  ;;  %v143_v14 = vld [vmem:[#allocation7 + $0x50] sm:$0xff]  ;;  %p820_p1 = scmp.ne.s32.totalorder %s553_s2, %s819_s28  ;;  %p825_p3 = scmp.lt.s32.totalorder %s819_s28, %s819_s28 }
  0x2a   :  { %628 = vmatpush3.msra.mxu0 %v890_v2  ;;  %677 = vmatpush3.msra.mxu1 %v147_v5  ;;  %v236_v15 = vld [vmem:[#allocation7 + $0xd8] sm:$0xff]  ;;  %v142_v16 = vld [vmem:[#allocation7 + $0x48] sm:$0xff]  ;;  %v235_v17 = vld [vmem:[#allocation7 + $0xd0] sm:$0xff] }
  0x2b   :  { %630 = vmatmul.mubr.msk.f32.vlgmr.msra.gmra.mxu0 %vm59_vm1, %v58_v3  ;;  %632 = vmatprep.subr.mxu0 %v850_v0  ;;  %v141_v18 = vld [vmem:[#allocation7 + $0x40] sm:$0xff]  ;;  %v234_v19 = vld [vmem:[#allocation7 + $0xc8] sm:$0xff]  ;;  %v140_v20 = vld [vmem:[#allocation7 + $0x38] sm:$0xff]  ;;  %p826_p4 = por %p825_p3, %p824_p2 }
  0x2c   :  { %633 = vmatpush3.msra.mxu0 %v888_v1  ;;  %636 = vmatprep.mubr.msk.f32.mxu0 %vm851_vm0, %v850_v0  ;;  %v233_v21 = vld [vmem:[#allocation7 + $0xc0] sm:$0xff]  ;;  %v139_v22 = vld [vmem:[#allocation7 + $0x30] sm:$0xff]  ;;  %v232_v23 = vld [vmem:[#allocation7 + $0xb8] sm:$0xff] }
  0x2d   :  { %634 = vmatprep.subr.mxu0 %v850_v0  ;;  %678 = vmatprep.subr.mxu1 %v850_v0  ;;  %v138_v24 = vld [vmem:[#allocation7 + $0x28] sm:$0xff]  ;;  %v231_v25 = vld [vmem:[#allocation7 + $0xb0] sm:$0xff]  ;;  %v137_v26 = vld [vmem:[#allocation7 + $0x20] sm:$0xff]  ;;  %p827_p5 = pnand %p826_p4, %p820_p1 }
  0x2e   :  { %635 = vmatpush3.msra.mxu0 %v890_v2  ;;  %679 = vmatpush3.msra.mxu1 %v146_v8  ;;  %v230_v27 = vld [vmem:[#allocation7 + $0xa8] sm:$0xff]  ;;  %v136_v28 = vld [vmem:[#allocation7 + $0x18] sm:$0xff]  ;;  %v229_v29 = vld [vmem:[#allocation7 + $0xa0] sm:$0xff] }
  0x2f   :  { %637 = vmatmul.mubr.msk.f32.vlgmr.msra.gmra.mxu0 %vm59_vm1, %v150_v6  ;;  %639 = vmatprep.subr.mxu0 %v850_v0  ;;  %v135_v30 = vld [vmem:[#allocation7 + $0x10] sm:$0xff]  ;;  %v228_v31 = vld [vmem:[#allocation7 + $0x98] sm:$0xff]  ;;  %v134_v32 = vld [vmem:[#allocation7 + $0x8] sm:$0xff] }
  0x30   :  { %640 = vmatpush3.msra.mxu0 %v240_v7  ;;  %680 = vmatprep.subr.mxu1 %v850_v0  ;;  %v227_v33 = vld [vmem:[#allocation7 + $0x90] sm:$0xff]  ;;  %v133_v34 = vld [vmem:[#allocation7] sm:$0xff]  ;;  %v226_v35 = vld [vmem:[#allocation7 + $0x88] sm:$0xff] }
  0x31   :  { %641 = vmatprep.subr.mxu0 %v850_v0  ;;  %681 = vmatpush3.msra.mxu1 %v145_v10  ;;  %v225_v36 = vld [vmem:[#allocation7 + $0x80] sm:$0xff]  ;;  %v472_v37 = vld [vmem:[#allocation7 + $0x178] sm:$0xff]  ;;  %v471_v39 = vld [vmem:[#allocation7 + $0x170] sm:$0xff] }
  0x32   :  { %642 = vmatpush3.msra.mxu0 %v239_v9  ;;  %682 = vmatprep.subr.mxu1 %v850_v0  ;;  %v470_v42 = vld [vmem:[#allocation7 + $0x168] sm:$0xff]  ;;  %v382_v44 = vld [vmem:[#allocation5 + $0x10] sm:$0xff]  ;;  %v469_v45 = vld [vmem:[#allocation7 + $0x160] sm:$0xff] }
  0x33   :  { %643 = vmatprep.subr.mxu0 %v850_v0  ;;  %683 = vmatpush3.msra.mxu1 %v144_v12  ;;  %v468_v46 = vld [vmem:[#allocation7 + $0x158] sm:$0xff]  ;;  %v467_v47 = vld [vmem:[#allocation7 + $0x150] sm:$0xff]  ;;  %v466_v48 = vld [vmem:[#allocation7 + $0x148] sm:$0xff] }
  0x34   :  { %644 = vmatpush3.msra.mxu0 %v238_v11  ;;  %684 = vmatprep.subr.mxu1 %v850_v0  ;;  %v465_v49 = vld [vmem:[#allocation7 + $0x140] sm:$0xff]  ;;  %v464_v50 = vld [vmem:[#allocation7 + $0x138] sm:$0xff]  ;;  %v463_v51 = vld [vmem:[#allocation7 + $0x130] sm:$0xff] }
  0x35   :  { %645 = vmatprep.subr.mxu0 %v850_v0  ;;  %685 = vmatpush3.msra.mxu1 %v143_v14  ;;  %v462_v52 = vld [vmem:[#allocation7 + $0x128] sm:$0xff]  ;;  %v461_v53 = vld [vmem:[#allocation7 + $0x120] sm:$0xff]  ;;  %v460_v54 = vld [vmem:[#allocation7 + $0x118] sm:$0xff] }
  0x36   :  { %646 = vmatpush3.msra.mxu0 %v237_v13  ;;  %686 = vmatprep.subr.mxu1 %v850_v0  ;;  %v459_v55 = vld [vmem:[#allocation7 + $0x110] sm:$0xff]  ;;  %v458_v56 = vld [vmem:[#allocation7 + $0x108] sm:$0xff]  ;;  %v457_v57 = vld [vmem:[#allocation7 + $0x100] sm:$0xff] }
  0x37   :  { %647 = vmatprep.subr.mxu0 %v850_v0  ;;  %687 = vmatpush3.msra.mxu1 %v142_v16 }
  0x38   :  { %648 = vmatpush3.msra.mxu0 %v236_v15  ;;  %688 = vmatprep.subr.mxu1 %v850_v0 }
  0x39   :  { %649 = vmatprep.subr.mxu0 %v850_v0  ;;  %689 = vmatpush3.msra.mxu1 %v141_v18 }
  0x3a   :  { %650 = vmatpush3.msra.mxu0 %v235_v17  ;;  %690 = vmatprep.subr.mxu1 %v850_v0 }
  0x3b   :  { %651 = vmatprep.subr.mxu0 %v850_v0  ;;  %691 = vmatpush3.msra.mxu1 %v140_v20 }
  0x3c   :  { %652 = vmatpush3.msra.mxu0 %v234_v19  ;;  %692 = vmatprep.subr.mxu1 %v850_v0 }
  0x3d   :  { %653 = vmatprep.subr.mxu0 %v850_v0  ;;  %693 = vmatpush3.msra.mxu1 %v139_v22 }
  0x3e   :  { %654 = vmatpush3.msra.mxu0 %v233_v21  ;;  %694 = vmatprep.subr.mxu1 %v850_v0 }
  0x3f   :  { %655 = vmatprep.subr.mxu0 %v850_v0  ;;  %695 = vmatpush3.msra.mxu1 %v138_v24 }
  0x40   :  { %656 = vmatpush3.msra.mxu0 %v232_v23  ;;  %696 = vmatprep.subr.mxu1 %v850_v0 }
  0x41   :  { %657 = vmatprep.subr.mxu0 %v850_v0  ;;  %697 = vmatpush3.msra.mxu1 %v137_v26 }
  0x42   :  { %658 = vmatpush3.msra.mxu0 %v231_v25  ;;  %698 = vmatprep.subr.mxu1 %v850_v0 }
  0x43   :  { %659 = vmatprep.subr.mxu0 %v850_v0  ;;  %699 = vmatpush3.msra.mxu1 %v136_v28 }
  0x44   :  { %660 = vmatpush3.msra.mxu0 %v230_v27  ;;  %700 = vmatprep.subr.mxu1 %v850_v0 }
  0x45   :  { %661 = vmatprep.subr.mxu0 %v850_v0  ;;  %701 = vmatpush3.msra.mxu1 %v135_v30 }
  0x46   :  { %662 = vmatpush3.msra.mxu0 %v229_v29  ;;  %702 = vmatprep.subr.mxu1 %v850_v0 }
  0x47   :  { %663 = vmatprep.subr.mxu0 %v850_v0  ;;  %703 = vmatpush3.msra.mxu1 %v134_v32 }
  0x48   :  { %664 = vmatpush3.msra.mxu0 %v228_v31  ;;  %704 = vmatprep.subr.mxu1 %v850_v0 }
  0x49   :  { %665 = vmatprep.subr.mxu0 %v850_v0  ;;  %671 = vmatprep.mubr.msk.f32.mxu0 %vm851_vm0, %v850_v0 }
  0x4a   :  { %666 = vmatpush3.msra.mxu0 %v227_v33  ;;  %705 = vmatpush3.msra.mxu1 %v133_v34 }
  0x4b   :  { %667 = vmatprep.subr.mxu0 %v850_v0  ;;  %716 = vmatprep.subr.mxu1 %v850_v0 }
  0x4c   :  { %668 = vmatpush3.msra.mxu0 %v226_v35 }
  0x4d   :  { %669 = vmatprep.subr.mxu0 %v850_v0 }
  0x4e   :  { %670 = vmatpush3.msra.mxu0 %v225_v36 }
  0x4f   :  { %709 = vmatprep.subr.mxu0 %v850_v0 }
  0xeb   :  { %v129_v38 = vpop.f32.mrf.mxu0 }
  0xec   :  { %707 = vmatmul.mubr.f32.vlgmr.msra.gmra.mxu1 %v129_v38 }
  0xed   :  { %v631_v40 = vpop.f32.mrf.mxu0  ;;  %717 = vmatpush3.msra.mxu1 %v472_v37  ;;  %748 = vmatprep.mubr.msk.f32.mxu1 %vm851_vm0, %v850_v0 }
  0xee   :  { %718 = vmatprep.subr.mxu1 %v850_v0 }
  0xef   :  { %v220_v41 = vpop.f32.mrf.mxu0  ;;  %719 = vmatpush3.msra.mxu1 %v471_v39 }
  0xf0   :  { %672 = vmatmul.mubr.f32.vlgmr.msra.gmra.mxu0 %v220_v41  ;;  %720 = vmatprep.subr.mxu1 %v850_v0 }
  0xf1   :  { %v638_v43 = vpop.f32.mrf.mxu0  ;;  %710 = vmatpush3.msra.mxu0 %v888_v1  ;;  %713 = vmatprep.mubr.msk.f32.mxu0 %vm851_vm0, %v850_v0 }
  0xf2   :  { %711 = vmatprep.subr.mxu0 %v850_v0  ;;  %721 = vmatpush3.msra.mxu1 %v470_v42 }
  0xf3   :  { %712 = vmatpush3.msra.mxu0 %v890_v2  ;;  %722 = vmatprep.subr.mxu1 %v850_v0 }
  0xf4   :  { %714 = vmatmul.mubr.msk.f32.vlgmr.msra.gmra.mxu0 %vm59_vm1, %v382_v44  ;;  %723 = vmatpush3.msra.mxu1 %v469_v45 }
  0xf5   :  { %724 = vmatprep.subr.mxu1 %v850_v0 }
  0xf6   :  { %725 = vmatpush3.msra.mxu1 %v468_v46 }
  0xf7   :  { %726 = vmatprep.subr.mxu1 %v850_v0 }
  0xf8   :  { %727 = vmatpush3.msra.mxu1 %v467_v47 }
  0xf9   :  { %728 = vmatprep.subr.mxu1 %v850_v0 }
  0xfa   :  { %729 = vmatpush3.msra.mxu1 %v466_v48 }
  0xfb   :  { %730 = vmatprep.subr.mxu1 %v850_v0 }
  0xfc   :  { %731 = vmatpush3.msra.mxu1 %v465_v49 }
  0xfd   :  { %732 = vmatprep.subr.mxu1 %v850_v0 }
  0xfe   :  { %733 = vmatpush3.msra.mxu1 %v464_v50 }
  0xff   :  { %734 = vmatprep.subr.mxu1 %v850_v0 }
 0x100   :  { %735 = vmatpush3.msra.mxu1 %v463_v51 }
 0x101   :  { %736 = vmatprep.subr.mxu1 %v850_v0 }
 0x102   :  { %737 = vmatpush3.msra.mxu1 %v462_v52 }
 0x103   :  { %738 = vmatprep.subr.mxu1 %v850_v0 }
 0x104   :  { %739 = vmatpush3.msra.mxu1 %v461_v53 }
 0x105   :  { %740 = vmatprep.subr.mxu1 %v850_v0 }
 0x106   :  { %741 = vmatpush3.msra.mxu1 %v460_v54 }
 0x107   :  { %742 = vmatprep.subr.mxu1 %v850_v0 }
 0x108   :  { %743 = vmatpush3.msra.mxu1 %v459_v55 }
 0x109   :  { %744 = vmatprep.subr.mxu1 %v850_v0 }
 0x10a   :  { %745 = vmatpush3.msra.mxu1 %v458_v56 }
 0x10b   :  { %746 = vmatprep.subr.mxu1 %v850_v0 }
 0x10c   :  { %747 = vmatpush3.msra.mxu1 %v457_v57 }
 0x1ac   :  { %v377_v58 = vpop.f32.mrf.mxu1 }
 0x1ae   :  { %v708_v59 = vpop.f32.mrf.mxu1 }
 0x1b0   :  { %v307_v60 = vpop.f32.mrf.mxu0 }
 0x1b1   :  { %v378_v61 = vadd.f32 %v377_v58, %v307_v60 }
 0x1b2   :  { %v673_v62 = vpop.f32.mrf.mxu0 }
 0x1b4   :  { %v452_v63 = vpop.f32.mrf.mxu0 }
 0x1b5   :  { %749 = vmatmul.mubr.f32.vlgmr.msra.gmra.mxu1 %v452_v63 }
 0x1b6   :  { %v715_v1 = vpop.f32.mrf.mxu0 }
 0x275   :  { %v539_v2 = vpop.f32.mrf.mxu1 }
 0x276   :  { %v543_v3 = vadd.f32 %v539_v2, %v378_v61 }
 0x277   :  { %v750_v4 = vpop.f32.mrf.mxu1 }
 0x278   :  { %v544_v5 = vmax.f32 %v543_v3, 0.0 }
 0x27a   :  { %545 = vst [vmem:[#allocation8] sm:$0xff] %v544_v5 }
 0x27b   :  { %830 = shalt.err (!%p827_p5)
}
 0x27c   :  { %555 = dma.vmem_to_hbm [thread:$0]  %s553_s2, 128, %s967_s3, [#allocation4]  }
 0x27d   :  { %843 = dma.done.wait [#allocation4], 128  }
 0x27e   :  { %844 = vsyncadd [#allocation4], 4294967168 }
 0x27f   :  { %559 = vsyncpa [#allocation3], 1 }
 0x280   :  { %560 = vsyncpa [#allocation6], 1 }
 0x281   :  { %561 = vsyncpa [#allocation4], 1 }

</bundles_post_ra>
